<compile_context>
chip_gen: v5e
topology: v5e:2x2
jax: 0.10.0
libtpu: 0.0.40
codegen_flags: <defaults>
</compile_context>

<pallas_src>
import functools

import jax
import jax.numpy as jnp
from jax.experimental import pallas as pl
from jax.experimental.pallas import tpu as pltpu


def _round_up(x, m):
    return ((x + m - 1) // m) * m


def _mlp_kernel(x_ref, w1_ref, b1_ref, w2_ref, b2_ref, o_ref):
    # In-kernel downcast (VPU has huge slack on this mem-bound kernel); the
    # MXU dots take bf16 inputs and accumulate in f32.
    x = x_ref[...].astype(w1_ref.dtype)
    h = jnp.dot(x, w1_ref[...], preferred_element_type=jnp.float32)
    h = jnp.maximum(h + b1_ref[...], 0.0)                 # (1, H) bias broadcasts
    y = jnp.dot(h.astype(w2_ref.dtype), w2_ref[...],
                preferred_element_type=jnp.float32)
    o_ref[...] = (y + b2_ref[...]).astype(o_ref.dtype)


def _dense_reference(ui, w1, b1, w2, b2, compute_dtype):
    """Pure-JAX path with the same bf16-in / f32-accumulate math."""
    x = ui.astype(compute_dtype)
    h = jnp.dot(x, w1.astype(compute_dtype),
                preferred_element_type=jnp.float32) + b1.astype(jnp.float32)
    h = jnp.maximum(h, 0.0)
    y = jnp.dot(h.astype(compute_dtype), w2.astype(compute_dtype),
                preferred_element_type=jnp.float32) + b2.astype(jnp.float32)
    return y


@functools.partial(
    jax.jit,
    static_argnames=("max_block_b", "compute_dtype", "out_dtype",
                     "min_pallas_rows"))
def logic_interaction_forward(ui, w1, b1, w2, b2, *, max_block_b=2048,
                              compute_dtype=jnp.bfloat16, out_dtype=None,
                              min_pallas_rows=0):
    """ui: (B, input_dim). w1: (in, hidden), w2: (hidden, out) pre-transposed.

    Returns (B, output_dim) in `out_dtype` (defaults to ui.dtype; pass
    jnp.bfloat16 to halve output HBM writeback if downstream tolerates it).
    """
    B, input_dim = ui.shape
    hidden_dim = w1.shape[1]
    output_dim = w2.shape[1]
    out_dtype = ui.dtype if out_dtype is None else out_dtype

    # Small-batch fast path: Pallas fixed cost dominates tiny GEMMs.
    if B < min_pallas_rows:
        return _dense_reference(ui, w1, b1, w2, b2, compute_dtype).astype(out_dtype)

    x_bytes = jnp.dtype(ui.dtype).itemsize
    w_bytes = jnp.dtype(compute_dtype).itemsize
    o_bytes = jnp.dtype(out_dtype).itemsize

    # ---- batch tiling -------------------------------------------------------
    b8 = _round_up(B, 8)
    n_steps = pl.cdiv(b8, max_block_b)
    # v7x: make sure both TensorCores get a grid step once the batch is large
    # enough for the split to be worthwhile (>=512 rows per step).
    if n_steps < 2 and b8 >= 1024:
        n_steps = 2
    block_b = _round_up(pl.cdiv(b8, n_steps), 8)

    # ---- VMEM budget: shrink block_b if the footprint would not fit --------
    weights_vmem = 2 * ((input_dim * hidden_dim + hidden_dim * output_dim) * w_bytes
                        + (hidden_dim + output_dim) * 4)
    per_row = (2 * input_dim * x_bytes          # double-buffered x tile
               + 2 * output_dim * o_bytes       # double-buffered out tile
               + hidden_dim * 4)                # f32 hidden intermediate
    headroom = 4 << 20
    budget = 48 << 20                           # safe under v7x's 64 MiB VMEM
    while block_b > 8 and weights_vmem + block_b * per_row + headroom > budget:
        block_b = max(8, _round_up(block_b // 2, 8))

    Bp = _round_up(B, block_b)
    grid = (Bp // block_b,)

    # Pad batch rows only when the tile does not divide B (features untouched).
    if Bp != B:
        x_in = jnp.zeros((Bp, input_dim), ui.dtype).at[:B, :].set(ui)
    else:
        x_in = ui

    # Weights/biases: one-time tiny cast; stay resident in VMEM across steps.
    w1_c = w1.astype(compute_dtype)
    w2_c = w2.astype(compute_dtype)
    b1_c = b1.astype(jnp.float32).reshape(1, hidden_dim)
    b2_c = b2.astype(jnp.float32).reshape(1, output_dim)

    vmem_limit = int(min(max(weights_vmem + block_b * per_row + headroom,
                             32 << 20), 64 << 20))

    cost = pl.CostEstimate(
        flops=2 * Bp * (input_dim * hidden_dim + hidden_dim * output_dim),
        transcendentals=0,
        bytes_accessed=(Bp * input_dim * x_bytes
                        + Bp * output_dim * o_bytes
                        + (input_dim * hidden_dim + hidden_dim * output_dim) * w_bytes
                        + (hidden_dim + output_dim) * 4),
    )

    out_p = pl.pallas_call(
        _mlp_kernel,
        out_shape=jax.ShapeDtypeStruct((Bp, output_dim), out_dtype),
        grid_spec=pltpu.PrefetchScalarGridSpec(
            num_scalar_prefetch=0,
            grid=grid,
            in_specs=[
                # Batch tile; feature axes always use the full array extent,
                # so no feature padding is ever required.
                pl.BlockSpec((block_b, input_dim), lambda i: (i, 0)),
                pl.BlockSpec((input_dim, hidden_dim), lambda i: (0, 0)),
                pl.BlockSpec((1, hidden_dim), lambda i: (0, 0)),
                pl.BlockSpec((hidden_dim, output_dim), lambda i: (0, 0)),
                pl.BlockSpec((1, output_dim), lambda i: (0, 0)),
            ],
            out_specs=pl.BlockSpec((block_b, output_dim), lambda i: (i, 0)),
        ),
        compiler_params=pltpu.CompilerParams(
            dimension_semantics=("parallel",),
            vmem_limit_bytes=vmem_limit,
        ),
        cost_estimate=cost,
    )(x_in, w1_c, b1_c, w2_c, b2_c)

    return out_p if Bp == B else out_p[:B, :]


def init_params(key, input_dim=128, hidden_dim=64, output_dim=64,
                dtype=jnp.float32):
    """torch.nn.Linear-style init (uniform +- 1/sqrt(fan_in)).

    Weights are returned already transposed to (in, out) for the kernel.
    """
    k1, k2, k3, k4 = jax.random.split(key, 4)
    lim1 = 1.0 / jnp.sqrt(input_dim)
    lim2 = 1.0 / jnp.sqrt(hidden_dim)
    w1 = jax.random.uniform(k1, (input_dim, hidden_dim), dtype, -lim1, lim1)
    b1 = jax.random.uniform(k2, (hidden_dim,), dtype, -lim1, lim1)
    w2 = jax.random.uniform(k3, (hidden_dim, output_dim), dtype, -lim2, lim2)
    b2 = jax.random.uniform(k4, (output_dim,), dtype, -lim2, lim2)
    return w1, b1, w2, b2


def reference_forward(ui, w1, b1, w2, b2, compute_dtype=jnp.bfloat16):
    return _dense_reference(ui, w1, b1, w2, b2, compute_dtype).astype(ui.dtype)


if __name__ == "__main__":
    key = jax.random.PRNGKey(0)
    k_x, k_p = jax.random.split(key)

    batch = 8
    input_dim, hidden_dim, output_dim = 128, 64, 64

    ui = jax.random.normal(k_x, (batch, input_dim), dtype=jnp.float32)
    w1, b1, w2, b2 = init_params(k_p, input_dim, hidden_dim, output_dim)

    out = logic_interaction_forward(ui, w1, b1, w2, b2)
    out = jax.block_until_ready(out)

    ref = reference_forward(ui, w1, b1, w2, b2)
    assert out.shape == (batch, output_dim)
    assert jnp.allclose(out, ref, atol=1e-2, rtol=1e-2), "mismatch vs reference"

    print("KERNEL_OK")
</pallas_src>

<mosaic_0001>
module attributes {stable_mosaic.version = 11 : i64} {
  func.func @_mlp_kernel(%arg0: i32, %arg1: memref<8x128xf32, #tpu.memory_space<vmem>>, %arg2: memref<128x64xbf16, #tpu.memory_space<vmem>>, %arg3: memref<1x64xf32, #tpu.memory_space<vmem>>, %arg4: memref<64x64xbf16, #tpu.memory_space<vmem>>, %arg5: memref<1x64xf32, #tpu.memory_space<vmem>>, %arg6: memref<8x64xf32, #tpu.memory_space<vmem>>) attributes {dimension_semantics = [#tpu.dimension_semantics<parallel>], iteration_bounds = array<i64: 1>, scalar_prefetch = 0 : i64, scratch_operands = 0 : i64, tpu.core_type = #tpu.core_type<tc>, window_params = [{transform_indices = @transform_0, window_bounds = array<i64: 8, 128>}, {pipeline_mode = #tpu.pipeline_mode<synchronous>, transform_indices = @transform_1, window_bounds = array<i64: 128, 64>}, {pipeline_mode = #tpu.pipeline_mode<synchronous>, transform_indices = @transform_2, window_bounds = array<i64: 1, 64>}, {pipeline_mode = #tpu.pipeline_mode<synchronous>, transform_indices = @transform_3, window_bounds = array<i64: 64, 64>}, {pipeline_mode = #tpu.pipeline_mode<synchronous>, transform_indices = @transform_4, window_bounds = array<i64: 1, 64>}, {transform_indices = @transform_5, window_bounds = array<i64: 8, 64>}]} {
    %c0 = arith.constant 0 : index
    %c0_0 = arith.constant 0 : index
    %0 = vector.load %arg1[%c0, %c0_0] : memref<8x128xf32, #tpu.memory_space<vmem>>, vector<8x128xf32>
    %1 = arith.truncf %0 : vector<8x128xf32> to vector<8x128xbf16>
    %c0_1 = arith.constant 0 : index
    %c0_2 = arith.constant 0 : index
    %2 = vector.load %arg2[%c0_1, %c0_2] : memref<128x64xbf16, #tpu.memory_space<vmem>>, vector<128x64xbf16>
    %cst = arith.constant dense<0.000000e+00> : vector<8x64xf32>
    %3 = tpu.matmul %1, %2, %cst {dimension_numbers = #tpu.dot_dimension_numbers<[1], [0], [0], [1], [0, 0, 1, 1], [], []>} : vector<8x128xbf16>, vector<128x64xbf16>, vector<8x64xf32> -> vector<8x64xf32>
    %c0_3 = arith.constant 0 : index
    %c0_4 = arith.constant 0 : index
    %4 = vector.load %arg3[%c0_3, %c0_4] : memref<1x64xf32, #tpu.memory_space<vmem>>, vector<1x64xf32>
    %5 = vector.broadcast %4 : vector<1x64xf32> to vector<8x64xf32>
    %6 = arith.addf %3, %5 : vector<8x64xf32>
    %cst_5 = arith.constant 0.000000e+00 : f32
    %7 = vector.broadcast %cst_5 : f32 to vector<8x64xf32>
    %8 = arith.maximumf %6, %7 : vector<8x64xf32>
    %9 = arith.truncf %8 : vector<8x64xf32> to vector<8x64xbf16>
    %c0_6 = arith.constant 0 : index
    %c0_7 = arith.constant 0 : index
    %10 = vector.load %arg4[%c0_6, %c0_7] : memref<64x64xbf16, #tpu.memory_space<vmem>>, vector<64x64xbf16>
    %cst_8 = arith.constant dense<0.000000e+00> : vector<8x64xf32>
    %11 = tpu.matmul %9, %10, %cst_8 {dimension_numbers = #tpu.dot_dimension_numbers<[1], [0], [0], [1], [0, 0, 1, 1], [], []>} : vector<8x64xbf16>, vector<64x64xbf16>, vector<8x64xf32> -> vector<8x64xf32>
    %c0_9 = arith.constant 0 : index
    %c0_10 = arith.constant 0 : index
    %12 = vector.load %arg5[%c0_9, %c0_10] : memref<1x64xf32, #tpu.memory_space<vmem>>, vector<1x64xf32>
    %13 = vector.broadcast %12 : vector<1x64xf32> to vector<8x64xf32>
    %14 = arith.addf %11, %13 : vector<8x64xf32>
    %c0_11 = arith.constant 0 : index
    %c0_12 = arith.constant 0 : index
    %15 = vector.load %arg6[%c0_11, %c0_12] : memref<8x64xf32, #tpu.memory_space<vmem>>, vector<8x64xf32>
    tpu.vector_store %arg6[%c0_11, %c0_12], %14 {strides = array<i32>} : memref<8x64xf32, #tpu.memory_space<vmem>>, vector<8x64xf32>,
    return
  }
  func.func @transform_0(%arg0: i32) -> (i32, i32) {
    %c0_i32 = arith.constant 0 : i32
    %c0_i32_0 = arith.constant 0 : i32
    return %arg0, %c0_i32 : i32, i32
  }
  func.func @transform_1(%arg0: i32) -> (i32, i32) {
    %c0_i32 = arith.constant 0 : i32
    %c0_i32_0 = arith.constant 0 : i32
    %c0_i32_1 = arith.constant 0 : i32
    return %c0_i32, %c0_i32_0 : i32, i32
  }
  func.func @transform_2(%arg0: i32) -> (i32, i32) {
    %c0_i32 = arith.constant 0 : i32
    %c0_i32_0 = arith.constant 0 : i32
    %c0_i32_1 = arith.constant 0 : i32
    return %c0_i32, %c0_i32_0 : i32, i32
  }
  func.func @transform_3(%arg0: i32) -> (i32, i32) {
    %c0_i32 = arith.constant 0 : i32
    %c0_i32_0 = arith.constant 0 : i32
    %c0_i32_1 = arith.constant 0 : i32
    return %c0_i32, %c0_i32_0 : i32, i32
  }
  func.func @transform_4(%arg0: i32) -> (i32, i32) {
    %c0_i32 = arith.constant 0 : i32
    %c0_i32_0 = arith.constant 0 : i32
    %c0_i32_1 = arith.constant 0 : i32
    return %c0_i32, %c0_i32_0 : i32, i32
  }
  func.func @transform_5(%arg0: i32) -> (i32, i32) {
    %c0_i32 = arith.constant 0 : i32
    %c0_i32_0 = arith.constant 0 : i32
    return %arg0, %c0_i32 : i32, i32
  }
}

</mosaic_0001>

<bundles_post_ra>
// kernel: logic_interaction_forward.1
= control target key start
LH: loop header
LB: loop body
LE: loop exit
PB: predicated region body
PF: predicated region fallthrough
CT: control target
= control target key end

     0   :  { %s346_s0 = inlined_call_operand.vmem [shape: f32[8,128], index: 0, kind: input, shape index: {}]   ;;  %s347_s1 = inlined_call_operand.vmem [shape: bf16[128,64], index: 1, kind: input, shape index: {}]   ;;  %s348_s2 = inlined_call_operand.vmem [shape: f32[1,64], index: 2, kind: input, shape index: {}]   ;;  %s349_s3 = inlined_call_operand.vmem [shape: bf16[64,64], index: 3, kind: input, shape index: {}]   ;;  %s350_s4 = inlined_call_operand.vmem [shape: f32[1,64], index: 4, kind: input, shape index: {}]   ;;  %s351_s5 = inlined_call_operand.hbm [shape: f32[8,64], index: 5, kind: output, shape index: {}]  }
   0x1   :  { %v233_v0 = vld [vmem:[%s347_s1 + $0x38] sm:$0xff]  ;;  %v232_v1 = vld [vmem:[%s347_s1 + $0x30] sm:$0xff] }
   0x2   :  { %92 = vmatpush.bf16.msra.mxu0 %v233_v0  ;;  %v237_v2 = vld [vmem:[%s349_s3 + $0x18] sm:$0xff] }
   0x3   :  { %10 = vsyncpa [#allocation3], 0  ;;  %151 = vmatpush.bf16.msra.mxu1 %v237_v2  ;;  %v236_v3 = vld [vmem:[%s349_s3 + $0x10] sm:$0xff]  ;;  %v231_v4 = vld [vmem:[%s347_s1 + $0x28] sm:$0xff]  ;;  %vm143_vm0 = vcmask 523264   ;;  %s267_s21 = smov [#allocation2]  }
   0x4   :  { %v230_v5 = vld [vmem:[%s347_s1 + $0x20] sm:$0xff]  ;;  %v229_v6 = vld [vmem:[%s347_s1 + $0x18] sm:$0xff]  ;;  %v228_v7 = vld [vmem:[%s347_s1 + $0x10] sm:$0xff]  ;;  %s166_s22 = sshll.u32 %s267_s21, 4  ;;  %s168_s24 = sshll.u32 %s351_s5, 4  ;;  %s167_s22 = int_to_ptr.vmem [resolvable:$true] %s166_s22  ;;  %s169_s24 = int_to_ptr.hbm [resolvable:$true] %s168_s24 }
   0x5   :  { %v227_v8 = vld [vmem:[%s347_s1 + $0x8] sm:$0xff]  ;;  %v226_v9 = vld [vmem:[%s347_s1] sm:$0xff] }
   0x6   :  { %93 = vmatpush.bf16.msra.mxu0 %v232_v1  ;;  %v22_v10 = vld [vmem:[%s346_s0] sm:$0xff]  ;;  %v235_v12 = vld [vmem:[%s349_s3 + $0x8] sm:$0xff] }
   0x7   :  { %152 = vmatpush.bf16.msra.mxu1 %v236_v3  ;;  %v23_v11 = vpack.c.bf16 %v22_v10, %v22_v10  ;;  %v234_v13 = vld [vmem:[%s349_s3] sm:$0xff] }
   0x8   :  { %v239_v14 = vld [vmem:[%s348_s2] ss:$0 sm:$0xff] }
   0x9   :  { %v240_v20 = vld [vmem:[%s350_s4] ss:$0 sm:$0xff] }
   0xa   :  { %94 = vmatpush.bf16.msra.mxu0 %v231_v4 }
   0xb   :  { %153 = vmatpush.bf16.msra.mxu1 %v235_v12 }
   0xe   :  { %95 = vmatpush.bf16.msra.mxu0 %v230_v5 }
   0xf   :  { %154 = vmatpush.bf16.msra.mxu1 %v234_v13 }
  0x12   :  { %96 = vmatpush.bf16.msra.mxu0 %v229_v6 }
  0x16   :  { %97 = vmatpush.bf16.msra.mxu0 %v228_v7 }
  0x1a   :  { %98 = vmatpush.bf16.msra.mxu0 %v227_v8 }
  0x1e   :  { %99 = vmatpush.bf16.msra.mxu0 %v226_v9 }
  0x21   :  { %100 = vmatmul.bf16.vlgmr.msra.gmra.mxu0 %v23_v11 }
  0x9e   :  { %v101_v15 = vpop.f32.mrf.mxu0 }
  0x9f   :  { %v102_v16 = vadd.f32 %v239_v14, %v101_v15 }
  0xa1   :  { %v105_v17 = vmax.f32 %v102_v16, 0.0 }
  0xa3   :  { %v106_v18 = vpack.c.bf16 %v105_v17, %v105_v17 }
  0xa5   :  { %225 = vmatmul.msk.bf16.vlgmr.msra.gmra.mxu1 %vm143_vm0, %v106_v18 }
  0xa6   :  { %v103_v19 = vpop.f32.mrf.mxu0 }
 0x122   :  { %v156_v21 = vpop.f32.mrf.mxu1 }
 0x123   :  { %v157_v22 = vadd.f32 %v240_v20, %v156_v21 }
 0x125   :  { %160 = vst.msk [vmem:[#allocation2] sm:$0xff] %vm143_vm0, %v157_v22 }
 0x126   :  { %171 = dma.vmem_to_hbm [thread:$0]  %s167_s22, 128, %s169_s24, [#allocation3]  }
 0x12a   :  { %v158_v23 = vpop.f32.mrf.mxu1 }
 0x12b   :  { %265 = dma.done.wait [#allocation3], 128  }
 0x12c   :  { %266 = vsyncadd [#allocation3], 4294967168 }
 0x12d   :  { %176 = vsyncpa [#allocation3], 1 }

</bundles_post_ra>
